<compile_context>
chip_gen: v7x
topology: tpu7x:2x2x1
jax: 0.10.0
libtpu: 0.0.40
codegen_flags: <defaults>
</compile_context>

<pallas_src>
import math

import jax
import jax.numpy as jnp
from jax.experimental import pallas as pl
from jax.experimental.pallas import tpu as pltpu


# ----------------------------------------------------------------------------
# Shared cell math (fused matmuls + fused biases + EUP-friendly sigmoid)
# ----------------------------------------------------------------------------
def _gru_cell_math(fact, h_prev, g, w_fused, b_fact, u_fused, b_u):
    """fact:(M,D) h_prev:(M,H) g:(M,1) w_fused:(D,2H) b_fact:(1,2H)
    u_fused:(H,2H) b_u:(1,H)  ->  (M,H)"""
    H = h_prev.shape[-1]

    # Two fused MXU matmuls instead of four (N = 2H).
    xw = jnp.dot(fact, w_fused, preferred_element_type=jnp.float32) + b_fact
    hu = jnp.dot(h_prev, u_fused, preferred_element_type=jnp.float32)

    # r_i = sigmoid(Wr f + br + Ur h + bur)   (br+bur folded into b_fact[:, :H])
    # sigmoid(x) == 0.5*tanh(0.5*x) + 0.5  -> transcendental goes to the EUP.
    r_i = 0.5 * jnp.tanh(0.5 * (xw[:, :H] + hu[:, :H])) + 0.5

    # h_tilda = tanh(W f + bw + r_i * (U h + bu))   (bw folded into b_fact[:, H:])
    h_tilda = jnp.tanh(xw[:, H:] + r_i * (hu[:, H:] + b_u))

    # hi = g * h_tilda + (1 - g) * h_prev
    return g * h_tilda + (1.0 - g) * h_prev


# ----------------------------------------------------------------------------
# Kernel 1: single-cell forward (matches the PyTorch module's forward),
#           batch-tiled with a "parallel" grid axis.
# ----------------------------------------------------------------------------
def attn_gru_cell_kernel(fact_ref, h_ref, g_ref,
                         wf_ref, bf_ref, uh_ref, bu_ref,
                         out_ref):
    out_ref[...] = _gru_cell_math(
        fact_ref[...], h_ref[...], g_ref[...],
        wf_ref[...], bf_ref[...], uh_ref[...], bu_ref[...])


def attn_gru_cell(fact, hi_1, g, fused, *, tile_b=128):
    """fact: (B, D), hi_1: (B, H), g: (B,). Returns (B, H)."""
    B, D = fact.shape
    H = hi_1.shape[1]
    H2 = 2 * H
    g2 = g.reshape(B, 1).astype(jnp.float32)          # torch: g.unsqueeze(1)

    tb = min(tile_b, B)
    grid = (pl.cdiv(B, tb),)

    in_specs = [
        pl.BlockSpec((tb, D), lambda i: (i, 0)),        # fact      (batch tile)
        pl.BlockSpec((tb, H), lambda i: (i, 0)),        # h_prev    (batch tile)
        pl.BlockSpec((tb, 1), lambda i: (i, 0)),        # g         (batch tile)
        pl.BlockSpec((D, H2), lambda i: (0, 0)),        # [WrT|WT]  resident
        pl.BlockSpec((1, H2), lambda i: (0, 0)),        # [br+bur|bw] resident
        pl.BlockSpec((H, H2), lambda i: (0, 0)),        # [UrT|UT]  resident
        pl.BlockSpec((1, H), lambda i: (0, 0)),         # bu        resident
    ]
    out_spec = pl.BlockSpec((tb, H), lambda i: (i, 0))

    return pl.pallas_call(
        attn_gru_cell_kernel,
        out_shape=jax.ShapeDtypeStruct((B, H), jnp.float32),
        grid=grid,
        in_specs=in_specs,
        out_specs=out_spec,
        compiler_params=pltpu.CompilerParams(
            dimension_semantics=("parallel",)),          # lets v7x use both TCs
    )(fact.astype(jnp.float32), hi_1.astype(jnp.float32), g2,
      fused["W_fused"], fused["b_fact"], fused["U_fused"], fused["bu"])


# ----------------------------------------------------------------------------
# Kernel 2: time-fused sequence — grid over T, weights stay VMEM-resident,
#           hidden state carried in a VMEM scratch accumulator.
# ----------------------------------------------------------------------------
def attn_gru_seq_kernel(fact_ref, g_ref, h0_ref,
                        wf_ref, bf_ref, uh_ref, bu_ref,
                        out_ref, h_carry):
    t = pl.program_id(0)

    @pl.when(t == 0)
    def _():
        h_carry[...] = h0_ref[...]

    h_new = _gru_cell_math(
        fact_ref[0], h_carry[...], g_ref[0],
        wf_ref[...], bf_ref[...], uh_ref[...], bu_ref[...])

    h_carry[...] = h_new
    out_ref[0] = h_new


def attn_gru_sequence(facts, h0, gs, fused):
    """facts: (T, B, D), h0: (B, H), gs: (T, B). Returns all hidden states (T, B, H)."""
    T, B, D = facts.shape
    H = h0.shape[1]
    H2 = 2 * H
    g3 = gs.reshape(T, B, 1).astype(jnp.float32)

    in_specs = [
        pl.BlockSpec((1, B, D), lambda t: (t, 0, 0)),   # fact_t
        pl.BlockSpec((1, B, 1), lambda t: (t, 0, 0)),   # g_t
        pl.BlockSpec((B, H), lambda t: (0, 0)),         # h0 (only read at t==0)
        pl.BlockSpec((D, H2), lambda t: (0, 0)),        # weights: resident
        pl.BlockSpec((1, H2), lambda t: (0, 0)),
        pl.BlockSpec((H, H2), lambda t: (0, 0)),
        pl.BlockSpec((1, H), lambda t: (0, 0)),
    ]
    out_spec = pl.BlockSpec((1, B, H), lambda t: (t, 0, 0))

    return pl.pallas_call(
        attn_gru_seq_kernel,
        out_shape=jax.ShapeDtypeStruct((T, B, H), jnp.float32),
        grid=(T,),
        in_specs=in_specs,
        out_specs=out_spec,
        scratch_shapes=[pltpu.VMEM((B, H), jnp.float32)],
        compiler_params=pltpu.CompilerParams(
            dimension_semantics=("arbitrary",)),         # sequential carry over T
    )(facts.astype(jnp.float32), g3, h0.astype(jnp.float32),
      fused["W_fused"], fused["b_fact"], fused["U_fused"], fused["bu"])


# ----------------------------------------------------------------------------
# Parameter init (same distributions as the PyTorch module) + host-side fusion
# ----------------------------------------------------------------------------
def init_params(key, input_size, hidden_size):
    """xavier-normal weights (torch init.xavier_normal_), PyTorch-Linear-default
    uniform biases. Returns (raw, fused): raw is the per-layer layout used by
    the pure-JAX reference; fused is the packed layout the kernel consumes."""
    ks = jax.random.split(key, 8)

    def xavier_normal(k, fan_out, fan_in):
        std = math.sqrt(2.0 / (fan_in + fan_out))
        w = std * jax.random.normal(k, (fan_out, fan_in), dtype=jnp.float32)
        return w.T                                      # (fan_in, fan_out) for x @ W

    def bias_uniform(k, fan_in, n):
        bound = 1.0 / math.sqrt(fan_in)
        return jax.random.uniform(k, (1, n), jnp.float32, -bound, bound)

    WrT = xavier_normal(ks[0], hidden_size, input_size)
    br = bias_uniform(ks[1], input_size, hidden_size)
    UrT = xavier_normal(ks[2], hidden_size, hidden_size)
    bur = bias_uniform(ks[3], hidden_size, hidden_size)
    WT = xavier_normal(ks[4], hidden_size, input_size)
    bw = bias_uniform(ks[5], input_size, hidden_size)
    UT = xavier_normal(ks[6], hidden_size, hidden_size)
    bu = bias_uniform(ks[7], hidden_size, hidden_size)

    raw = {"WrT": WrT, "br": br, "UrT": UrT, "bur": bur,
           "WT": WT, "bw": bw, "UT": UT, "bu": bu}
    fused = {
        "W_fused": jnp.concatenate([WrT, WT], axis=1),        # (D, 2H)
        "U_fused": jnp.concatenate([UrT, UT], axis=1),        # (H, 2H)
        "b_fact": jnp.concatenate([br + bur, bw], axis=1),    # (1, 2H)
        "bu": bu,                                             # (1, H)
    }
    return raw, fused


# ----------------------------------------------------------------------------
# Pure-JAX references
# ----------------------------------------------------------------------------
def attn_gru_cell_ref(fact, hi_1, g, p):
    r_i = jax.nn.sigmoid(fact @ p["WrT"] + p["br"] + hi_1 @ p["UrT"] + p["bur"])
    h_tilda = jnp.tanh(fact @ p["WT"] + p["bw"] + r_i * (hi_1 @ p["UT"] + p["bu"]))
    g2 = g[:, None]
    return g2 * h_tilda + (1.0 - g2) * hi_1


def attn_gru_sequence_ref(facts, h0, gs, p):
    def step(h, inp):
        f, g = inp
        h_new = attn_gru_cell_ref(f, h, g, p)
        return h_new, h_new
    _, hs = jax.lax.scan(step, h0, (facts, gs))
    return hs


if __name__ == "__main__":
    B, T, INPUT_SIZE, HIDDEN_SIZE = 8, 8, 64, 128

    key = jax.random.PRNGKey(0)
    k_param, k_fact, k_h, k_g, k_facts, k_gs = jax.random.split(key, 6)

    raw, fused = init_params(k_param, INPUT_SIZE, HIDDEN_SIZE)

    # --- single-cell forward (exactly the PyTorch module's forward) ---------
    fact = jax.random.normal(k_fact, (B, INPUT_SIZE), dtype=jnp.float32)
    hi_1 = jax.random.normal(k_h, (B, HIDDEN_SIZE), dtype=jnp.float32)
    g = jax.random.uniform(k_g, (B,), dtype=jnp.float32)

    out = jax.block_until_ready(attn_gru_cell(fact, hi_1, g, fused))
    ref = attn_gru_cell_ref(fact, hi_1, g, raw)
    assert out.shape == (B, HIDDEN_SIZE)
    assert jnp.allclose(out, ref, atol=1e-5, rtol=1e-5), "single-cell mismatch"

    # --- time-fused sequence (weights VMEM-resident across T steps) ---------
    facts = jax.random.normal(k_facts, (T, B, INPUT_SIZE), dtype=jnp.float32)
    gs = jax.random.uniform(k_gs, (T, B), dtype=jnp.float32)

    hs = jax.block_until_ready(attn_gru_sequence(facts, hi_1, gs, fused))
    hs_ref = attn_gru_sequence_ref(facts, hi_1, gs, raw)
    assert hs.shape == (T, B, HIDDEN_SIZE)
    assert jnp.allclose(hs, hs_ref, atol=1e-4, rtol=1e-4), "sequence mismatch"

    print("KERNEL_OK")
</pallas_src>

<mosaic_0001>
module attributes {stable_mosaic.version = 11 : i64} {
  func.func @attn_gru_cell_kernel(%arg0: i32, %arg1: memref<8x64xf32, #tpu.memory_space<vmem>>, %arg2: memref<8x128xf32, #tpu.memory_space<vmem>>, %arg3: memref<8x1xf32, #tpu.memory_space<vmem>>, %arg4: memref<64x256xf32, #tpu.memory_space<vmem>>, %arg5: memref<1x256xf32, #tpu.memory_space<vmem>>, %arg6: memref<128x256xf32, #tpu.memory_space<vmem>>, %arg7: memref<1x128xf32, #tpu.memory_space<vmem>>, %arg8: memref<8x128xf32, #tpu.memory_space<vmem>>) attributes {dimension_semantics = [#tpu.dimension_semantics<parallel>], iteration_bounds = array<i64: 1>, scalar_prefetch = 0 : i64, scratch_operands = 0 : i64, tpu.core_type = #tpu.core_type<tc>, window_params = [{transform_indices = @transform_0, window_bounds = array<i64: 8, 64>}, {transform_indices = @transform_1, window_bounds = array<i64: 8, 128>}, {transform_indices = @transform_2, window_bounds = array<i64: 8, 1>}, {pipeline_mode = #tpu.pipeline_mode<synchronous>, transform_indices = @transform_3, window_bounds = array<i64: 64, 256>}, {pipeline_mode = #tpu.pipeline_mode<synchronous>, transform_indices = @transform_4, window_bounds = array<i64: 1, 256>}, {pipeline_mode = #tpu.pipeline_mode<synchronous>, transform_indices = @transform_5, window_bounds = array<i64: 128, 256>}, {pipeline_mode = #tpu.pipeline_mode<synchronous>, transform_indices = @transform_6, window_bounds = array<i64: 1, 128>}, {transform_indices = @transform_7, window_bounds = array<i64: 8, 128>}]} {
    %c0 = arith.constant 0 : index
    %c0_0 = arith.constant 0 : index
    %0 = vector.load %arg1[%c0, %c0_0] : memref<8x64xf32, #tpu.memory_space<vmem>>, vector<8x64xf32>
    %c0_1 = arith.constant 0 : index
    %c0_2 = arith.constant 0 : index
    %1 = vector.load %arg2[%c0_1, %c0_2] : memref<8x128xf32, #tpu.memory_space<vmem>>, vector<8x128xf32>
    %c0_3 = arith.constant 0 : index
    %c0_4 = arith.constant 0 : index
    %2 = vector.load %arg3[%c0_3, %c0_4] : memref<8x1xf32, #tpu.memory_space<vmem>>, vector<8x1xf32>
    %c0_5 = arith.constant 0 : index
    %c0_6 = arith.constant 0 : index
    %3 = vector.load %arg4[%c0_5, %c0_6] : memref<64x256xf32, #tpu.memory_space<vmem>>, vector<64x256xf32>
    %c0_7 = arith.constant 0 : index
    %c0_8 = arith.constant 0 : index
    %4 = vector.load %arg5[%c0_7, %c0_8] : memref<1x256xf32, #tpu.memory_space<vmem>>, vector<1x256xf32>
    %c0_9 = arith.constant 0 : index
    %c0_10 = arith.constant 0 : index
    %5 = vector.load %arg6[%c0_9, %c0_10] : memref<128x256xf32, #tpu.memory_space<vmem>>, vector<128x256xf32>
    %c0_11 = arith.constant 0 : index
    %c0_12 = arith.constant 0 : index
    %6 = vector.load %arg7[%c0_11, %c0_12] : memref<1x128xf32, #tpu.memory_space<vmem>>, vector<1x128xf32>
    %cst = arith.constant dense<0.000000e+00> : vector<8x256xf32>
    %7 = tpu.matmul %0, %3, %cst {dimension_numbers = #tpu.dot_dimension_numbers<[1], [0], [0], [1], [0, 0, 1, 1], [], []>} : vector<8x64xf32>, vector<64x256xf32>, vector<8x256xf32> -> vector<8x256xf32>
    %8 = vector.broadcast %4 : vector<1x256xf32> to vector<8x256xf32>
    %9 = arith.addf %7, %8 : vector<8x256xf32>
    %cst_13 = arith.constant dense<0.000000e+00> : vector<8x256xf32>
    %10 = tpu.matmul %1, %5, %cst_13 {dimension_numbers = #tpu.dot_dimension_numbers<[1], [0], [0], [1], [0, 0, 1, 1], [], []>} : vector<8x128xf32>, vector<128x256xf32>, vector<8x256xf32> -> vector<8x256xf32>
    %11 = vector.extract_strided_slice %9 {offsets = [0, 0], sizes = [8, 128], strides = [1, 1]} : vector<8x256xf32> to vector<8x128xf32>
    %12 = vector.extract_strided_slice %10 {offsets = [0, 0], sizes = [8, 128], strides = [1, 1]} : vector<8x256xf32> to vector<8x128xf32>
    %13 = arith.addf %11, %12 : vector<8x128xf32>
    %cst_14 = arith.constant 5.000000e-01 : f32
    %14 = vector.broadcast %cst_14 : f32 to vector<8x128xf32>
    %15 = arith.mulf %14, %13 : vector<8x128xf32>
    %16 = math.tanh %15 : vector<8x128xf32>
    %cst_15 = arith.constant 5.000000e-01 : f32
    %17 = vector.broadcast %cst_15 : f32 to vector<8x128xf32>
    %18 = arith.mulf %17, %16 : vector<8x128xf32>
    %cst_16 = arith.constant 5.000000e-01 : f32
    %19 = vector.broadcast %cst_16 : f32 to vector<8x128xf32>
    %20 = arith.addf %18, %19 : vector<8x128xf32>
    %21 = vector.extract_strided_slice %9 {offsets = [0, 128], sizes = [8, 128], strides = [1, 1]} : vector<8x256xf32> to vector<8x128xf32>
    %22 = vector.extract_strided_slice %10 {offsets = [0, 128], sizes = [8, 128], strides = [1, 1]} : vector<8x256xf32> to vector<8x128xf32>
    %23 = vector.broadcast %6 : vector<1x128xf32> to vector<8x128xf32>
    %24 = arith.addf %22, %23 : vector<8x128xf32>
    %25 = arith.mulf %20, %24 : vector<8x128xf32>
    %26 = arith.addf %21, %25 : vector<8x128xf32>
    %27 = math.tanh %26 : vector<8x128xf32>
    %28 = vector.broadcast %2 : vector<8x1xf32> to vector<8x128xf32>
    %29 = arith.mulf %28, %27 : vector<8x128xf32>
    %cst_17 = arith.constant 1.000000e+00 : f32
    %30 = vector.broadcast %cst_17 : f32 to vector<8x1xf32>
    %31 = arith.subf %30, %2 : vector<8x1xf32>
    %32 = vector.broadcast %31 : vector<8x1xf32> to vector<8x128xf32>
    %33 = arith.mulf %32, %1 : vector<8x128xf32>
    %34 = arith.addf %29, %33 : vector<8x128xf32>
    %c0_18 = arith.constant 0 : index
    %c0_19 = arith.constant 0 : index
    %35 = vector.load %arg8[%c0_18, %c0_19] : memref<8x128xf32, #tpu.memory_space<vmem>>, vector<8x128xf32>
    tpu.vector_store %arg8[%c0_18, %c0_19], %34 {strides = array<i32>} : memref<8x128xf32, #tpu.memory_space<vmem>>, vector<8x128xf32>,
    return
  }
  func.func @transform_0(%arg0: i32) -> (i32, i32) {
    %c0_i32 = arith.constant 0 : i32
    %c0_i32_0 = arith.constant 0 : i32
    return %arg0, %c0_i32 : i32, i32
  }
  func.func @transform_1(%arg0: i32) -> (i32, i32) {
    %c0_i32 = arith.constant 0 : i32
    %c0_i32_0 = arith.constant 0 : i32
    return %arg0, %c0_i32 : i32, i32
  }
  func.func @transform_2(%arg0: i32) -> (i32, i32) {
    %c0_i32 = arith.constant 0 : i32
    %c0_i32_0 = arith.constant 0 : i32
    return %arg0, %c0_i32 : i32, i32
  }
  func.func @transform_3(%arg0: i32) -> (i32, i32) {
    %c0_i32 = arith.constant 0 : i32
    %c0_i32_0 = arith.constant 0 : i32
    %c0_i32_1 = arith.constant 0 : i32
    return %c0_i32, %c0_i32_0 : i32, i32
  }
  func.func @transform_4(%arg0: i32) -> (i32, i32) {
    %c0_i32 = arith.constant 0 : i32
    %c0_i32_0 = arith.constant 0 : i32
    %c0_i32_1 = arith.constant 0 : i32
    return %c0_i32, %c0_i32_0 : i32, i32
  }
  func.func @transform_5(%arg0: i32) -> (i32, i32) {
    %c0_i32 = arith.constant 0 : i32
    %c0_i32_0 = arith.constant 0 : i32
    %c0_i32_1 = arith.constant 0 : i32
    return %c0_i32, %c0_i32_0 : i32, i32
  }
  func.func @transform_6(%arg0: i32) -> (i32, i32) {
    %c0_i32 = arith.constant 0 : i32
    %c0_i32_0 = arith.constant 0 : i32
    %c0_i32_1 = arith.constant 0 : i32
    return %c0_i32, %c0_i32_0 : i32, i32
  }
  func.func @transform_7(%arg0: i32) -> (i32, i32) {
    %c0_i32 = arith.constant 0 : i32
    %c0_i32_0 = arith.constant 0 : i32
    return %arg0, %c0_i32 : i32, i32
  }
}

</mosaic_0001>

<bundles_post_ra>
// kernel: tpu_custom_call.1
= control target key start
LH: loop header
LB: loop body
LE: loop exit
PB: predicated region body
PF: predicated region fallthrough
CT: control target
= control target key end

     0   :  { %12 = vsyncpa [#allocation3], 0  ;;  %s593_s0 = inlined_call_operand.vmem [shape: f32[8,64], index: 0, kind: input, shape index: {}]   ;;  %s594_s1 = inlined_call_operand.hbm [shape: f32[8,128], index: 1, kind: input, shape index: {}]   ;;  %s595_s2 = inlined_call_operand.vmem [shape: f32[8,1], index: 2, kind: input, shape index: {}]   ;;  %s596_s3 = inlined_call_operand.hbm [shape: f32[64,256], index: 3, kind: input, shape index: {}]   ;;  %s597_s4 = inlined_call_operand.vmem [shape: f32[1,256], index: 4, kind: input, shape index: {}]   ;;  %s598_s5 = inlined_call_operand.hbm [shape: f32[128,256], index: 5, kind: input, shape index: {}]   ;;  %s599_s6 = inlined_call_operand.vmem [shape: f32[1,128], index: 6, kind: input, shape index: {}]   ;;  %s600_s7 = inlined_call_operand.hbm [shape: f32[8,128], index: 7, kind: output, shape index: {}]  }
   0x1   :  { %13 = vsyncpa [#allocation6], 0 }
   0x2   :  { %14 = vsyncpa [#allocation4], 0  ;;  %s479_s24 = smov [#allocation5]   ;;  %s385_s28 = scalar_lea.hbm %s596_s3, 2048 }
   0x3   :  { %s34_s25 = sshll.u32 %s479_s24, 4  ;;  %p386_p0 = scmp.ne.s32.totalorder %s596_s3, %s385_s28  ;;  %s35_s25 = int_to_ptr.vmem [resolvable:$true] %s34_s25 }
   0x4   :  { %p389_p1 = scmp.lt.u32.totalorder %s385_s28, %s596_s3 }
   0x6   :  { %p391_p2 = pnand %p389_p1, %p386_p0 }
   0x8   :  { %394 = shalt.err (!%p391_p2)
}
   0x9   :  { %s395_s10 = scalar_lea.vmem %s35_s25, 2048  ;;  %p400_p4 = scmp.lt.s32.totalorder %s35_s25, %s35_s25 }
   0xa   :  { %p396_p3 = scmp.ne.s32.totalorder %s35_s25, %s395_s10  ;;  %p401_p5 = scmp.lt.s32.totalorder %s395_s10, %s395_s10 }
   0xc   :  { %p402_p6 = por %p401_p5, %p400_p4 }
   0xe   :  { %p403_p7 = pnand %p402_p6, %p396_p3 }
  0x10   :  { %406 = shalt.err (!%p403_p7)
}
  0x11   :  { %s480_s11 = smov 256   ;;  %s481_s12 = smov 16  }
  0x12   :  { %40 = dma.hbm_to_vmem [thread:$0]  %s596_s3, 2048, %s35_s25, [#allocation6], %s480_s11, %s480_s11, %s481_s12  }
  0x13   :  { %s482_s15 = smov [#allocation2]   ;;  %s483_s17 = smov [#allocation7]  }
  0x14   :  { %s23_s16 = sshll.u32 %s482_s15, 4  ;;  %s48_s18 = sshll.u32 %s483_s17, 4  ;;  %s24_s16 = int_to_ptr.vmem [resolvable:$true] %s23_s16  ;;  %s49_s18 = int_to_ptr.vmem [resolvable:$true] %s48_s18 }
  0x15   :  { %s407_s21 = scalar_lea.hbm %s594_s1, 128 }
  0x16   :  { %p408_p8 = scmp.ne.s32.totalorder %s594_s1, %s407_s21  ;;  %p411_p9 = scmp.lt.u32.totalorder %s407_s21, %s594_s1 }
  0x18   :  { %p413_p10 = pnand %p411_p9, %p408_p8 }
  0x1a   :  { %416 = shalt.err (!%p413_p10)
}
  0x1b   :  { %s417_s3 = scalar_lea.vmem %s24_s16, 128  ;;  %p422_p12 = scmp.lt.s32.totalorder %s24_s16, %s24_s16 }
  0x1c   :  { %p418_p11 = scmp.ne.s32.totalorder %s24_s16, %s417_s3  ;;  %p423_p13 = scmp.lt.s32.totalorder %s417_s3, %s417_s3 }
  0x1e   :  { %p424_p0 = por %p423_p13, %p422_p12 }
  0x20   :  { %p425_p1 = pnand %p424_p0, %p418_p11 }
  0x22   :  { %428 = shalt.err (!%p425_p1)
}
  0x23   :  { %26 = dma.hbm_to_vmem [thread:$0]  %s594_s1, 128, %s24_s16, [#allocation3]  }
  0x24   :  { %s429_s30 = scalar_lea.hbm %s598_s5, 4096 }
  0x25   :  { %p430_p2 = scmp.ne.s32.totalorder %s598_s5, %s429_s30  ;;  %p433_p3 = scmp.lt.u32.totalorder %s429_s30, %s598_s5 }
  0x27   :  { %p435_p4 = pnand %p433_p3, %p430_p2 }
  0x29   :  { %438 = shalt.err (!%p435_p4)
}
  0x2a   :  { %s439_s14 = scalar_lea.vmem %s49_s18, 4096  ;;  %p444_p6 = scmp.lt.s32.totalorder %s49_s18, %s49_s18 }
  0x2b   :  { %p440_p5 = scmp.ne.s32.totalorder %s49_s18, %s439_s14  ;;  %p445_p7 = scmp.lt.s32.totalorder %s439_s14, %s439_s14 }
  0x2d   :  { %p446_p8 = por %p445_p7, %p444_p6 }
  0x2f   :  { %p447_p9 = pnand %p446_p8, %p440_p5 }
  0x31   :  { %450 = shalt.err (!%p447_p9)
}
  0x32   :  { %54 = dma.hbm_to_vmem [thread:$0]  %s598_s5, 4096, %s49_s18, [#allocation6], %s480_s11, %s480_s11, %s481_s12  }
  0x33   :  { %473 = dma.done.wait [#allocation3], 128  }
  0x34   :  { %474 = vsyncadd [#allocation3], 4294967168 }
  0x35   :  { %475 = dma.done.wait [#allocation6], 6144  }
  0x36   :  { %476 = vsyncadd [#allocation6], 4294961152  ;;  %v484_v0 = vmov 0.0   ;;  %v485_v1 = vmov 0   ;;  %v87_v2 = vld [vmem:[#allocation7 + $0x8] sm:$0xff]  ;;  %v89_v3 = vld [vmem:[#allocation7 + $0x18] sm:$0xff] }
  0x37   :  { %198 = vmatprep.mubr.f32.mxu0 %v484_v0  ;;  %269 = vmatprep.mubr.f32.mxu1 %v484_v0  ;;  %v86_v4 = vld [vmem:[#allocation7] sm:$0xff]  ;;  %v340_v5 = vpack.c.bf16 %v89_v3, %v87_v2  ;;  %v88_v6 = vld [vmem:[#allocation7 + $0x10] sm:$0xff]  ;;  %v91_v7 = vld [vmem:[#allocation7 + $0x28] sm:$0xff]  ;;  %vm130_vm0 = vcmask 523264  }
  0x38   :  { %380 = vset.pattern.permute.xlu0 %v485_v1  ;;  %v93_v8 = vld [vmem:[#allocation7 + $0x38] sm:$0xff]  ;;  %v342_v9 = vpack.c.bf16 %v88_v6, %v86_v4  ;;  %v90_v11 = vld [vmem:[#allocation7 + $0x20] sm:$0xff]  ;;  %v92_v12 = vld [vmem:[#allocation7 + $0x30] sm:$0xff] }
  0x39   :  { %v344_v10 = vpack.c.bf16 %v93_v8, %v91_v7  ;;  %v95_v13 = vld [vmem:[#allocation7 + $0x48] sm:$0xff]  ;;  %341 = vmatprep.subr.bf16.mxu1 %v340_v5  ;;  %v97_v14 = vld [vmem:[#allocation7 + $0x58] sm:$0xff]  ;;  %v346_v15 = vpack.c.bf16 %v92_v12, %v90_v11  ;;  %v94_v16 = vld [vmem:[#allocation7 + $0x40] sm:$0xff] }
  0x3a   :  { %343 = vmatpush1.bf16.msra.mxu1 %v342_v9  ;;  %v70_v17 = vld [vmem:[#allocation5 + $0x8] sm:$0xff]  ;;  %v348_v18 = vpack.c.bf16 %v97_v14, %v95_v13  ;;  %v96_v19 = vld [vmem:[#allocation7 + $0x50] sm:$0xff]  ;;  %v72_v21 = vld [vmem:[#allocation5 + $0x18] sm:$0xff]  ;;  %v120_v14 = vlaneseq }
  0x3b   :  { %345 = vmatprep.subr.bf16.mxu1 %v344_v10  ;;  %v99_v20 = vld [vmem:[#allocation7 + $0x68] sm:$0xff]  ;;  %v101_v22 = vld [vmem:[#allocation7 + $0x78] sm:$0xff]  ;;  %v324_v23 = vpack.c.bf16 %v72_v21, %v70_v17  ;;  %v69_v24 = vld [vmem:[#allocation5] sm:$0xff]  ;;  %v350_v29 = vpack.c.bf16 %v96_v19, %v94_v16 }
  0x3c   :  { %v71_v25 = vld [vmem:[#allocation5 + $0x10] sm:$0xff]  ;;  %v74_v27 = vld [vmem:[#allocation5 + $0x28] sm:$0xff]  ;;  %v76_v28 = vld [vmem:[#allocation5 + $0x38] sm:$0xff]  ;;  %v352_v33 = vpack.c.bf16 %v101_v22, %v99_v20 }
  0x3d   :  { %v326_v26 = vpack.c.bf16 %v71_v25, %v69_v24  ;;  %325 = vmatprep.subr.bf16.mxu0 %v324_v23  ;;  %v98_v30 = vld [vmem:[#allocation7 + $0x60] sm:$0xff]  ;;  %v328_v31 = vpack.c.bf16 %v76_v28, %v74_v27  ;;  %v100_v34 = vld [vmem:[#allocation7 + $0x70] sm:$0xff]  ;;  %v103_v35 = vld [vmem:[#allocation7 + $0x88] sm:$0xff] }
  0x3e   :  { %347 = vmatpush1.bf16.msra.mxu1 %v346_v15  ;;  %v73_v32 = vld [vmem:[#allocation5 + $0x20] sm:$0xff]  ;;  %v75_v36 = vld [vmem:[#allocation5 + $0x30] sm:$0xff]  ;;  %v105_v37 = vld [vmem:[#allocation7 + $0x98] sm:$0xff]  ;;  %v354_v44 = vpack.c.bf16 %v100_v34, %v98_v30  ;;  %v121_v15 = vshrl.u32 %v120_v14, 7 }
  0x3f   :  { %349 = vmatprep.subr.bf16.mxu1 %v348_v18  ;;  %327 = vmatpush1.bf16.msra.mxu0 %v326_v26  ;;  %v330_v38 = vpack.c.bf16 %v75_v36, %v73_v32  ;;  %v78_v39 = vld [vmem:[#allocation5 + $0x48] sm:$0xff]  ;;  %v80_v40 = vld [vmem:[#allocation5 + $0x58] sm:$0xff]  ;;  %v77_v42 = vld [vmem:[#allocation5 + $0x40] sm:$0xff]  ;;  %v356_v47 = vpack.c.bf16 %v105_v37, %v103_v35 }
  0x40   :  { %329 = vmatprep.subr.bf16.mxu0 %v328_v31  ;;  %v332_v41 = vpack.c.bf16 %v80_v40, %v78_v39  ;;  %v79_v43 = vld [vmem:[#allocation5 + $0x50] sm:$0xff]  ;;  %v102_v45 = vld [vmem:[#allocation7 + $0x80] sm:$0xff]  ;;  %v82_v46 = vld [vmem:[#allocation5 + $0x68] sm:$0xff]  ;;  %v122_v16 = vsub.s32 0, %v121_v15  ;;  %v126_v26 = vsub.s32 1, %v121_v15 }
  0x41   :  { %v104_v48 = vld [vmem:[#allocation7 + $0x90] sm:$0xff]  ;;  %v107_v49 = vld [vmem:[#allocation7 + $0xa8] sm:$0xff]  ;;  %v334_v50 = vpack.c.bf16 %v79_v43, %v77_v42  ;;  %v84_v51 = vld [vmem:[#allocation5 + $0x78] sm:$0xff] }
  0x42   :  { %351 = vmatpush1.bf16.msra.mxu1 %v350_v29  ;;  %v109_v52 = vld [vmem:[#allocation7 + $0xb8] sm:$0xff]  ;;  %v336_v53 = vpack.c.bf16 %v84_v51, %v82_v46  ;;  %v81_v54 = vld [vmem:[#allocation5 + $0x60] sm:$0xff]  ;;  %v83_v55 = vld [vmem:[#allocation5 + $0x70] sm:$0xff]  ;;  %v358_v56 = vpack.c.bf16 %v104_v48, %v102_v45 }
  0x43   :  { %353 = vmatprep.subr.bf16.mxu1 %v352_v33  ;;  %331 = vmatpush1.bf16.msra.mxu0 %v330_v38  ;;  %v68_v57 = vld [vmem:[%s595_s2] sm:$0xff]  ;;  %v360_v58 = vpack.c.bf16 %v109_v52, %v107_v49  ;;  %v106_v59 = vld [vmem:[#allocation7 + $0xa0] sm:$0xff]  ;;  %v108_v60 = vld [vmem:[#allocation7 + $0xb0] sm:$0xff]  ;;  %v338_v61 = vpack.c.bf16 %v83_v55, %v81_v54 }
  0x44   :  { %333 = vmatprep.subr.bf16.mxu0 %v332_v41  ;;  %v111_v62 = vld [vmem:[#allocation7 + $0xc8] sm:$0xff]  ;;  %v113_v63 = vld [vmem:[#allocation7 + $0xd8] sm:$0xff]  ;;  %293 = vperm.xlu0 %380, %v68_v57   ;;  %v297_v0 = vsub.f32 1.0, %v68_v57  ;;  %v362_v1 = vpack.c.bf16 %v108_v60, %v106_v59  ;;  %v110_v3 = vld [vmem:[#allocation7 + $0xc0] sm:$0xff] }
  0x45   :  { %v364_v2 = vpack.c.bf16 %v113_v63, %v111_v62  ;;  %v112_v4 = vld [vmem:[#allocation7 + $0xd0] sm:$0xff]  ;;  %v66_v5 = vld [vmem:[%s593_s0] sm:$0xff]  ;;  %v115_v6 = vld [vmem:[#allocation7 + $0xe8] sm:$0xff] }
  0x46   :  { %355 = vmatpush1.bf16.msra.mxu1 %v354_v44  ;;  %v117_v7 = vld [vmem:[#allocation7 + $0xf8] sm:$0xff]  ;;  %v366_v8 = vpack.c.bf16 %v112_v4, %v110_v3  ;;  %v114_v10 = vld [vmem:[#allocation7 + $0xe0] sm:$0xff]  ;;  %v116_v11 = vld [vmem:[#allocation7 + $0xf0] sm:$0xff] }
  0x47   :  { %357 = vmatprep.subr.bf16.mxu1 %v356_v47  ;;  %335 = vmatpush1.bf16.msra.mxu0 %v334_v50  ;;  %v368_v9 = vpack.c.bf16 %v117_v7, %v115_v6  ;;  %v370_v12 = vpack.c.bf16 %v116_v11, %v114_v10  ;;  %v67_v13 = vld [vmem:[#allocation2] sm:$0xff] }
  0x48   :  { %337 = vmatprep.subr.bf16.mxu0 %v336_v53  ;;  %300 = vperm.xlu0 %380, %v297_v0   ;;  %v85_v18 = vld [vmem:[%s597_s4] sm:$0x3]  ;;  %s486_s4 = smov [#allocation8]  }
  0x49   :  { %v123_v20 = vrot.slane %v85_v18, %v122_v16  ;;  %v323_v28 = vld [vmem:[%s599_s6] ss:$0 sm:$0xff]  ;;  %v127_v29 = vrot.slane %v85_v18, %v126_v26  ;;  %s312_s19 = sshll.u32 %s486_s4, 4  ;;  %s313_s19 = int_to_ptr.vmem [resolvable:$true] %s312_s19 }
  0x4a   :  { %359 = vmatpush1.bf16.msra.mxu1 %v358_v56  ;;  %s451_s20 = scalar_lea.vmem %s313_s19, 128  ;;  %p456_p11 = scmp.lt.s32.totalorder %s313_s19, %s313_s19 }
  0x4b   :  { %361 = vmatprep.subr.bf16.mxu1 %v360_v58  ;;  %339 = vmatpush1.bf16.msra.mxu0 %v338_v61  ;;  %p452_p10 = scmp.ne.s32.totalorder %s313_s19, %s451_s20  ;;  %p457_p12 = scmp.lt.s32.totalorder %s451_s20, %s451_s20 }
  0x4d   :  { %p458_p13 = por %p457_p12, %p456_p11 }
  0x4e   :  { %363 = vmatpush1.bf16.msra.mxu1 %v362_v1  ;;  %322 = vmatmul.mubr.msk.f32.vlgmr.msra.gmra.mrb[0].mxu0 %vm130_vm0, %v66_v5 }
  0x4f   :  { %365 = vmatprep.subr.bf16.mxu1 %v364_v2  ;;  %p459_p0 = pnand %p458_p13, %p452_p10 }
  0x52   :  { %367 = vmatpush1.bf16.msra.mxu1 %v366_v8 }
  0x53   :  { %369 = vmatprep.subr.bf16.mxu1 %v368_v9 }
  0x56   :  { %371 = vmatpush1.bf16.msra.mxu1 %v370_v12 }
  0x59   :  { %270 = vmatmul.mubr.f32.vlgmr.msra.gmra.mrb[0].mxu1 %v67_v13 }
  0xc3   :  { %v294_v36 = vpop.permute.xlu0 %293 }
  0xc7   :  { %v301_v37 = vpop.permute.xlu0 %300 }
  0xc8   :  { %v303_v40 = vmul.f32 %v301_v37, %v67_v13 }
 0x121   :  { %v200_v17 = vpop.f32.mrb[0].mxu0 }
 0x122   :  { %v202_v19 = vpop.f32.mrb[1].mxu0  ;;  %v201_v21 = vadd.f32 %v200_v17, %v123_v20 }
 0x123   :  { %v203_v33 = vadd.f32 %v202_v19, %v127_v29 }
 0x12c   :  { %v271_v22 = vpop.f32.mrb[0].mxu1 }
 0x12d   :  { %v276_v23 = vadd.f32 %v271_v22, %v201_v21  ;;  %v273_v24 = vpop.f32.mrb[1].mxu1 }
 0x12e   :  { %v287_v32 = vadd.f32 %v323_v28, %v273_v24 }
 0x12f   :  { %v277_v25 = vmul.f32 0.5, %v276_v23 }
 0x131   :  { %381 = vtanh.f32 %v277_v25 }
 0x13b   :  { %v382_v27 = vpop.eup %381 }
 0x13c   :  { %v279_v30 = vmul.f32 0.5, %v382_v27 }
 0x13e   :  { %v280_v31 = vadd.f32 0.5, %v279_v30 }
 0x140   :  { %v288_v34 = vmul.f32 %v287_v32, %v280_v31 }
 0x142   :  { %v289_v35 = vadd.f32 %v288_v34, %v203_v33 }
 0x144   :  { %383 = vtanh.f32 %v289_v35 }
 0x14e   :  { %v384_v38 = vpop.eup %383 }
 0x14f   :  { %v296_v39 = vmul.f32 %v384_v38, %v294_v36 }
 0x151   :  { %v304_v41 = vadd.f32 %v303_v40, %v296_v39 }
 0x153   :  { %305 = vst [vmem:[#allocation8] sm:$0xff] %v304_v41 }
 0x154   :  { %462 = shalt.err (!%p459_p0)
}
 0x155   :  { %s463_s22 = scalar_lea.hbm %s600_s7, 128 }
 0x156   :  { %p464_p1 = scmp.ne.s32.totalorder %s600_s7, %s463_s22  ;;  %p467_p2 = scmp.lt.u32.totalorder %s463_s22, %s600_s7 }
 0x158   :  { %p469_p3 = pnand %p467_p2, %p464_p1 }
 0x15a   :  { %472 = shalt.err (!%p469_p3)
}
 0x15b   :  { %315 = dma.vmem_to_hbm [thread:$0]  %s313_s19, 128, %s600_s7, [#allocation4]  }
 0x15c   :  { %477 = dma.done.wait [#allocation4], 128  }
 0x15d   :  { %478 = vsyncadd [#allocation4], 4294967168 }
 0x15e   :  { %319 = vsyncpa [#allocation3], 1 }
 0x15f   :  { %320 = vsyncpa [#allocation6], 1 }
 0x160   :  { %321 = vsyncpa [#allocation4], 1 }

</bundles_post_ra>
